<compile_context>
chip_gen: v5e
topology: v5e:2x2
jax: 0.10.0
libtpu: 0.0.40
codegen_flags: <defaults>
</compile_context>

<pallas_src>
import functools

import jax
import jax.numpy as jnp
import numpy as np
from jax.experimental import pallas as pl
from jax.experimental.pallas import tpu as pltpu

EPS = 1e-5

# Column layout of the packed per-channel constant block `cvec` (Hd rows, f32):
#   cols 0..7 : b1, g1, be1, b2, g2, be2, b3 (padded to Hd), aux
#   aux rows  : [sum(b1), sum(b2), colsum(w1t)[0..Cin-1], 0...]
#   cols 8..  : w1t columns (w1t[:, k] at column 8 + k)
_B1, _G1, _BE1, _B2, _G2, _BE2, _B3, _AUX = range(8)
_NUM_SCALAR_COLS = 8


def _round_up(x, m):
    return ((x + m - 1) // m) * m


def _ln_relu_cf(h, s1, gamma, beta, inv_c):
    """LayerNorm over the channel (sublane) axis + affine + ReLU.

    The channel sum `s1` is supplied by the caller (computed on the MXU or via
    a closed form), so only the sum-of-squares pass remains on the VPU/XLU.
    h: (C, TN) f32; s1: (1, TN) f32; gamma/beta: (C, 1) f32.
    """
    s2 = jnp.sum(h * h, axis=0, keepdims=True)         # (1, TN)
    mu = s1 * inv_c
    var = s2 * inv_c - mu * mu
    hn = (h - mu) * jax.lax.rsqrt(var + EPS)
    return jnp.maximum(hn * gamma + beta, 0.0)


def mlp_kernel(x_ref, w2t_aug_ref, w3t_ref, cvec_ref, o_ref, *, hd, cin, cout):
    inv_c = 1.0 / hd
    x = x_ref[...].astype(jnp.float32)                  # (Cin, TN)
    cvec = cvec_ref[...]                                 # (Hd, 8+Cin) f32

    # ---- Layer 1: tiny-K (Cin) linear as a VPU outer-product expansion
    # (no MXU for K=2).  TODO(synk): a stride-0 sublane-broadcast load
    # (x_ref[pl.ds(k, Hd, stride=0), :]) could fold the x-row broadcast into
    # the vld; kept as implicit broadcasts for lowering robustness.
    w1_cols = cvec[:, _NUM_SCALAR_COLS:_NUM_SCALAR_COLS + cin]   # (Hd, Cin)
    h = w1_cols[:, 0:1] * x[0:1, :]
    for k in range(1, cin):
        h = h + w1_cols[:, k:k + 1] * x[k:k + 1, :]
    h = h + cvec[:, _B1:_B1 + 1]                         # (Hd, TN)

    # LN-1 channel sum via closed form (no (Hd, TN) cross-sublane reduction):
    #   s1 = sum_c h[c] = sum_k colsum(w1t)[k] * x[k] + sum(b1)
    s1 = cvec[2:3, _AUX:_AUX + 1] * x[0:1, :]
    for k in range(1, cin):
        s1 = s1 + cvec[2 + k:3 + k, _AUX:_AUX + 1] * x[k:k + 1, :]
    s1 = s1 + cvec[0:1, _AUX:_AUX + 1]
    h = _ln_relu_cf(h, s1, cvec[:, _G1:_G1 + 1], cvec[:, _BE1:_BE1 + 1], inv_c)

    # ---- Layer 2: bf16 MXU matmul with an appended channel-sum row, so the
    # LN-2 mean comes out of the same matmul.  f32 accumulation.
    h_bf = h.astype(jnp.bfloat16)
    h2aug = jnp.dot(w2t_aug_ref[...], h_bf,
                    preferred_element_type=jnp.float32)  # (Hd+pad, TN)
    h2 = h2aug[:hd, :] + cvec[:, _B2:_B2 + 1]            # (Hd, TN)
    s1_2 = h2aug[hd:hd + 1, :] + cvec[1:2, _AUX:_AUX + 1]  # + sum(b2)
    h2 = _ln_relu_cf(h2, s1_2, cvec[:, _G2:_G2 + 1], cvec[:, _BE2:_BE2 + 1],
                     inv_c)

    # ---- Layer 3: (Cout, Hd) bf16 MXU matmul; lane-dense f32 output store.
    out = jnp.dot(w3t_ref[...], h2.astype(jnp.bfloat16),
                  preferred_element_type=jnp.float32)    # (Cout, TN)
    out = out + cvec[:cout, _B3:_B3 + 1]
    o_ref[...] = out.astype(o_ref.dtype)


def pack_params(params):
    """One-time parameter packing (outside the per-call path)."""
    w1 = params["w1"]
    Cin, Hd = w1.shape
    w2 = params["w2"]
    w3 = params["w3"]
    Cout = w3.shape[1]
    assert Hd >= Cout and Hd >= 2 + Cin, "packing layout needs Hd >= max(Cout, Cin+2)"

    w1t = w1.T                                    # (Hd, Cin)
    w2t = w2.T                                    # (Hd, Hd)
    w3t = w3.T                                    # (Cout, Hd)

    # Append a column-sum row to W2^T (LN-2 mean from the MXU); pad rows to a
    # multiple of 8 sublanes.
    colsum_w2t = jnp.sum(w2t, axis=0, keepdims=True)             # (1, Hd)
    pad_rows = _round_up(Hd + 1, 8) - (Hd + 1)
    w2t_aug = jnp.concatenate(
        [w2t, colsum_w2t, jnp.zeros((pad_rows, Hd), jnp.float32)], axis=0)

    b1 = params["b1"].reshape(Hd)
    b2 = params["b2"].reshape(Hd)
    b3 = params["b3"].reshape(Cout)
    g1 = params["g1"].reshape(Hd)
    g2 = params["g2"].reshape(Hd)
    be1 = params["be1"].reshape(Hd)
    be2 = params["be2"].reshape(Hd)

    aux = jnp.zeros((Hd,), jnp.float32)
    aux = aux.at[0].set(jnp.sum(b1))
    aux = aux.at[1].set(jnp.sum(b2))
    aux = aux.at[2:2 + Cin].set(jnp.sum(w1t, axis=0))

    b3_pad = jnp.zeros((Hd,), jnp.float32).at[:Cout].set(b3)

    cvec = jnp.stack([b1, g1, be1, b2, g2, be2, b3_pad, aux], axis=1)  # (Hd, 8)
    cvec = jnp.concatenate([cvec, w1t], axis=1)                        # (Hd, 8+Cin)

    return dict(
        cvec=cvec.astype(jnp.float32),
        w2t_aug=w2t_aug.astype(jnp.bfloat16),    # MXU operands in bf16
        w3t=w3t.astype(jnp.bfloat16),
        cin=int(Cin),
        cout=int(Cout),
    )


@functools.partial(jax.jit, static_argnames=("max_tile_n", "min_grid_steps"))
def mlp_base_forward(x_nchw, packed, *, max_tile_n=8192, min_grid_steps=8):
    """x_nchw: (B, C_in, H, W) float32 -> (B, C_out, H, W) float32."""
    B, Cin, H, W = x_nchw.shape
    Hd = packed["cvec"].shape[0]
    Cout = packed["w3t"].shape[0]
    HW = H * W
    N = B * HW

    # Fold batch into the lane axis: (B, Cin, HW) -> (Cin, B*HW).  Cin is tiny
    # (coordinate channels) so this transpose is ~Cin rows of HBM traffic.
    x_cf = jnp.transpose(x_nchw.reshape(B, Cin, HW), (1, 0, 2)).reshape(Cin, N)

    # Lane tiling: multiples of 128, large tiles (up to 8192) to amortize the
    # ~0.35us per-grid-step overhead, but capped to keep >= min_grid_steps
    # steps so both v7x TensorCores get work and the pipeline actually overlaps.
    tile_cap = min(max_tile_n, _round_up(N, 128))
    tile_for_steps = max(128, _round_up(-(-N // min_grid_steps), 128))
    tile_n = min(tile_cap, tile_for_steps)
    Np = _round_up(N, tile_n)
    if Np != N:
        x_cf = jnp.pad(x_cf, ((0, 0), (0, Np - N)))
    num_tiles = Np // tile_n

    def const_spec(arr):
        return pl.BlockSpec(arr.shape, lambda j: (0, 0))

    cost = pl.CostEstimate(
        flops=int(2 * Np * (Cin * Hd + Hd * (Hd + 1) + Hd * Cout)),
        transcendentals=int(2 * Np),   # one rsqrt per LN layer per position
        bytes_accessed=int(4 * Np * (Cin + Cout)
                           + 2 * (packed["w2t_aug"].size + packed["w3t"].size)
                           + 4 * packed["cvec"].size),
    )

    kernel = functools.partial(mlp_kernel, hd=int(Hd), cin=int(Cin),
                               cout=int(Cout))

    out_cf = pl.pallas_call(
        kernel,
        out_shape=jax.ShapeDtypeStruct((Cout, Np), jnp.float32),
        grid_spec=pltpu.PrefetchScalarGridSpec(
            num_scalar_prefetch=0,
            grid=(num_tiles,),
            in_specs=[
                pl.BlockSpec((Cin, tile_n), lambda j: (0, j)),  # x tile
                const_spec(packed["w2t_aug"]),
                const_spec(packed["w3t"]),
                const_spec(packed["cvec"]),
            ],
            out_specs=pl.BlockSpec((Cout, tile_n), lambda j: (0, j)),
        ),
        compiler_params=pltpu.CompilerParams(
            dimension_semantics=("parallel",),
            vmem_limit_bytes=32 * 1024 * 1024,
        ),
        cost_estimate=cost,
    )(x_cf, packed["w2t_aug"], packed["w3t"], packed["cvec"])

    # Unfold lanes back to NCHW (Cout rows -> tiny transpose).
    out = out_cf[:, :N].reshape(Cout, B, HW)
    return jnp.transpose(out, (1, 0, 2)).reshape(B, Cout, H, W)


def make_params(key, dim_input_space, hidden_channels, out_channels):
    """Deterministic synthetic parameters (no_layers = 3)."""
    ks = jax.random.split(key, 3)

    def lin(k, fan_in, fan_out):
        bound = 1.0 / np.sqrt(fan_in)
        kw, kb = jax.random.split(k)
        w = jax.random.uniform(kw, (fan_in, fan_out), jnp.float32, -bound, bound)
        b = jax.random.uniform(kb, (1, fan_out), jnp.float32, -bound, bound)
        return w, b

    w1, b1 = lin(ks[0], dim_input_space, hidden_channels)
    w2, b2 = lin(ks[1], hidden_channels, hidden_channels)
    w3, b3 = lin(ks[2], hidden_channels, out_channels)
    return dict(
        w1=w1, b1=b1,
        g1=jnp.ones((1, hidden_channels), jnp.float32),
        be1=jnp.zeros((1, hidden_channels), jnp.float32),
        w2=w2, b2=b2,
        g2=jnp.ones((1, hidden_channels), jnp.float32),
        be2=jnp.zeros((1, hidden_channels), jnp.float32),
        w3=w3, b3=b3,
    )


def reference_forward(x_nchw, p):
    """Pure-JAX f32 reference mirroring the PyTorch Sequential semantics."""
    B, Cin, H, W = x_nchw.shape
    rows = jnp.transpose(x_nchw, (0, 2, 3, 1)).reshape(B * H * W, Cin)

    def ln(h, g, b):
        mu = h.mean(-1, keepdims=True)
        var = ((h - mu) ** 2).mean(-1, keepdims=True)
        return (h - mu) / jnp.sqrt(var + EPS) * g + b

    h = rows @ p["w1"] + p["b1"]
    h = jnp.maximum(ln(h, p["g1"], p["be1"]), 0.0)
    h = h @ p["w2"] + p["b2"]
    h = jnp.maximum(ln(h, p["g2"], p["be2"]), 0.0)
    h = h @ p["w3"] + p["b3"]
    out = h.reshape(B, H, W, -1)
    return jnp.transpose(out, (0, 3, 1, 2))


if __name__ == "__main__":
    # Module hyper-params (small, consistent with the forward):
    dim_input_space = 2    # e.g. 2-D coordinates as input channels
    hidden_channels = 32
    out_channels = 4
    # no_layers = 3 (hardcoded into the kernel structure)
    # TODO(synk): the `dim_linear > 3` flatten branch depends on a subclass
    #             attribute not defined in MLPBase; this script implements the
    #             pointwise-MLP semantics (identical math) with lane-folded,
    #             lane-dense plumbing.

    B, H, W = 2, 16, 16
    key = jax.random.PRNGKey(0)
    kx, kp = jax.random.split(key)

    x = jax.random.normal(kx, (B, dim_input_space, H, W), jnp.float32)
    params = make_params(kp, dim_input_space, hidden_channels, out_channels)
    packed = pack_params(params)

    out = mlp_base_forward(x, packed)
    out = jax.block_until_ready(out)

    ref = reference_forward(x, params)
    assert out.shape == (B, out_channels, H, W)
    # bf16 MXU operands in layers 2/3 -> loosened tolerance (LN re-normalizes,
    # so the error stays bounded at the bf16-rounding level).
    np.testing.assert_allclose(np.asarray(out), np.asarray(ref),
                               rtol=2e-2, atol=2e-2)
    print("KERNEL_OK")
</pallas_src>

<mosaic_0001>
module attributes {stable_mosaic.version = 11 : i64} {
  func.func @mlp_kernel(%arg0: i32, %arg1: memref<2x128xf32, #tpu.memory_space<vmem>>, %arg2: memref<40x32xbf16, #tpu.memory_space<vmem>>, %arg3: memref<4x32xbf16, #tpu.memory_space<vmem>>, %arg4: memref<32x10xf32, #tpu.memory_space<vmem>>, %arg5: memref<4x128xf32, #tpu.memory_space<vmem>>) attributes {dimension_semantics = [#tpu.dimension_semantics<parallel>], iteration_bounds = array<i64: 4>, scalar_prefetch = 0 : i64, scratch_operands = 0 : i64, tpu.core_type = #tpu.core_type<tc>, window_params = [{transform_indices = @transform_0, window_bounds = array<i64: 2, 128>}, {pipeline_mode = #tpu.pipeline_mode<synchronous>, transform_indices = @transform_1, window_bounds = array<i64: 40, 32>}, {pipeline_mode = #tpu.pipeline_mode<synchronous>, transform_indices = @transform_2, window_bounds = array<i64: 4, 32>}, {pipeline_mode = #tpu.pipeline_mode<synchronous>, transform_indices = @transform_3, window_bounds = array<i64: 32, 10>}, {transform_indices = @transform_4, window_bounds = array<i64: 4, 128>}]} {
    %c0 = arith.constant 0 : index
    %c0_0 = arith.constant 0 : index
    %0 = vector.load %arg1[%c0, %c0_0] : memref<2x128xf32, #tpu.memory_space<vmem>>, vector<2x128xf32>
    %c0_1 = arith.constant 0 : index
    %c0_2 = arith.constant 0 : index
    %1 = vector.load %arg4[%c0_1, %c0_2] : memref<32x10xf32, #tpu.memory_space<vmem>>, vector<32x10xf32>
    %2 = vector.extract_strided_slice %1 {offsets = [0, 8], sizes = [32, 2], strides = [1, 1]} : vector<32x10xf32> to vector<32x2xf32>
    %3 = vector.extract_strided_slice %2 {offsets = [0, 0], sizes = [32, 1], strides = [1, 1]} : vector<32x2xf32> to vector<32x1xf32>
    %4 = vector.extract_strided_slice %0 {offsets = [0, 0], sizes = [1, 128], strides = [1, 1]} : vector<2x128xf32> to vector<1x128xf32>
    %5 = vector.broadcast %3 : vector<32x1xf32> to vector<32x128xf32>
    %6 = vector.broadcast %4 : vector<1x128xf32> to vector<32x128xf32>
    %7 = arith.mulf %5, %6 : vector<32x128xf32>
    %8 = vector.extract_strided_slice %2 {offsets = [0, 1], sizes = [32, 1], strides = [1, 1]} : vector<32x2xf32> to vector<32x1xf32>
    %9 = vector.extract_strided_slice %0 {offsets = [1, 0], sizes = [1, 128], strides = [1, 1]} : vector<2x128xf32> to vector<1x128xf32>
    %10 = vector.broadcast %8 : vector<32x1xf32> to vector<32x128xf32>
    %11 = vector.broadcast %9 : vector<1x128xf32> to vector<32x128xf32>
    %12 = arith.mulf %10, %11 : vector<32x128xf32>
    %13 = arith.addf %7, %12 : vector<32x128xf32>
    %14 = vector.extract_strided_slice %1 {offsets = [0, 0], sizes = [32, 1], strides = [1, 1]} : vector<32x10xf32> to vector<32x1xf32>
    %15 = vector.broadcast %14 : vector<32x1xf32> to vector<32x128xf32>
    %16 = arith.addf %13, %15 : vector<32x128xf32>
    %17 = vector.extract_strided_slice %1 {offsets = [2, 7], sizes = [1, 1], strides = [1, 1]} : vector<32x10xf32> to vector<1x1xf32>
    %18 = vector.extract_strided_slice %0 {offsets = [0, 0], sizes = [1, 128], strides = [1, 1]} : vector<2x128xf32> to vector<1x128xf32>
    %19 = vector.broadcast %17 : vector<1x1xf32> to vector<1x128xf32>
    %20 = arith.mulf %19, %18 : vector<1x128xf32>
    %21 = vector.extract_strided_slice %1 {offsets = [3, 7], sizes = [1, 1], strides = [1, 1]} : vector<32x10xf32> to vector<1x1xf32>
    %22 = vector.extract_strided_slice %0 {offsets = [1, 0], sizes = [1, 128], strides = [1, 1]} : vector<2x128xf32> to vector<1x128xf32>
    %23 = vector.broadcast %21 : vector<1x1xf32> to vector<1x128xf32>
    %24 = arith.mulf %23, %22 : vector<1x128xf32>
    %25 = arith.addf %20, %24 : vector<1x128xf32>
    %26 = vector.extract_strided_slice %1 {offsets = [0, 7], sizes = [1, 1], strides = [1, 1]} : vector<32x10xf32> to vector<1x1xf32>
    %27 = vector.broadcast %26 : vector<1x1xf32> to vector<1x128xf32>
    %28 = arith.addf %25, %27 : vector<1x128xf32>
    %29 = vector.extract_strided_slice %1 {offsets = [0, 1], sizes = [32, 1], strides = [1, 1]} : vector<32x10xf32> to vector<32x1xf32>
    %30 = vector.extract_strided_slice %1 {offsets = [0, 2], sizes = [32, 1], strides = [1, 1]} : vector<32x10xf32> to vector<32x1xf32>
    %31 = arith.mulf %16, %16 : vector<32x128xf32>
    %cst = arith.constant dense<0.000000e+00> : vector<128xf32>
    %32 = vector.multi_reduction <add>, %31, %cst [0] : vector<32x128xf32> to vector<128xf32>
    %33 = vector.shape_cast %32 : vector<128xf32> to vector<1x128xf32>
    %cst_3 = arith.constant 3.125000e-02 : f32
    %34 = vector.broadcast %cst_3 : f32 to vector<1x128xf32>
    %35 = arith.mulf %28, %34 : vector<1x128xf32>
    %cst_4 = arith.constant 3.125000e-02 : f32
    %36 = vector.broadcast %cst_4 : f32 to vector<1x128xf32>
    %37 = arith.mulf %33, %36 : vector<1x128xf32>
    %38 = arith.mulf %35, %35 : vector<1x128xf32>
    %39 = arith.subf %37, %38 : vector<1x128xf32>
    %40 = vector.broadcast %35 : vector<1x128xf32> to vector<32x128xf32>
    %41 = arith.subf %16, %40 : vector<32x128xf32>
    %cst_5 = arith.constant 9.99999974E-6 : f32
    %42 = vector.broadcast %cst_5 : f32 to vector<1x128xf32>
    %43 = arith.addf %39, %42 : vector<1x128xf32>
    %44 = math.rsqrt %43 : vector<1x128xf32>
    %45 = vector.broadcast %44 : vector<1x128xf32> to vector<32x128xf32>
    %46 = arith.mulf %41, %45 : vector<32x128xf32>
    %47 = vector.broadcast %29 : vector<32x1xf32> to vector<32x128xf32>
    %48 = arith.mulf %46, %47 : vector<32x128xf32>
    %49 = vector.broadcast %30 : vector<32x1xf32> to vector<32x128xf32>
    %50 = arith.addf %48, %49 : vector<32x128xf32>
    %cst_6 = arith.constant 0.000000e+00 : f32
    %51 = vector.broadcast %cst_6 : f32 to vector<32x128xf32>
    %52 = arith.maximumf %50, %51 : vector<32x128xf32>
    %53 = arith.truncf %52 : vector<32x128xf32> to vector<32x128xbf16>
    %c0_7 = arith.constant 0 : index
    %c0_8 = arith.constant 0 : index
    %54 = vector.load %arg2[%c0_7, %c0_8] : memref<40x32xbf16, #tpu.memory_space<vmem>>, vector<40x32xbf16>
    %cst_9 = arith.constant dense<0.000000e+00> : vector<40x128xf32>
    %55 = tpu.matmul %54, %53, %cst_9 {dimension_numbers = #tpu.dot_dimension_numbers<[1], [0], [0], [1], [0, 0, 1, 1], [], []>} : vector<40x32xbf16>, vector<32x128xbf16>, vector<40x128xf32> -> vector<40x128xf32>
    %56 = vector.extract_strided_slice %55 {offsets = [0, 0], sizes = [32, 128], strides = [1, 1]} : vector<40x128xf32> to vector<32x128xf32>
    %57 = vector.extract_strided_slice %1 {offsets = [0, 3], sizes = [32, 1], strides = [1, 1]} : vector<32x10xf32> to vector<32x1xf32>
    %58 = vector.broadcast %57 : vector<32x1xf32> to vector<32x128xf32>
    %59 = arith.addf %56, %58 : vector<32x128xf32>
    %60 = vector.extract_strided_slice %55 {offsets = [32, 0], sizes = [1, 128], strides = [1, 1]} : vector<40x128xf32> to vector<1x128xf32>
    %61 = vector.extract_strided_slice %1 {offsets = [1, 7], sizes = [1, 1], strides = [1, 1]} : vector<32x10xf32> to vector<1x1xf32>
    %62 = vector.broadcast %61 : vector<1x1xf32> to vector<1x128xf32>
    %63 = arith.addf %60, %62 : vector<1x128xf32>
    %64 = vector.extract_strided_slice %1 {offsets = [0, 4], sizes = [32, 1], strides = [1, 1]} : vector<32x10xf32> to vector<32x1xf32>
    %65 = vector.extract_strided_slice %1 {offsets = [0, 5], sizes = [32, 1], strides = [1, 1]} : vector<32x10xf32> to vector<32x1xf32>
    %66 = arith.mulf %59, %59 : vector<32x128xf32>
    %cst_10 = arith.constant dense<0.000000e+00> : vector<128xf32>
    %67 = vector.multi_reduction <add>, %66, %cst_10 [0] : vector<32x128xf32> to vector<128xf32>
    %68 = vector.shape_cast %67 : vector<128xf32> to vector<1x128xf32>
    %cst_11 = arith.constant 3.125000e-02 : f32
    %69 = vector.broadcast %cst_11 : f32 to vector<1x128xf32>
    %70 = arith.mulf %63, %69 : vector<1x128xf32>
    %cst_12 = arith.constant 3.125000e-02 : f32
    %71 = vector.broadcast %cst_12 : f32 to vector<1x128xf32>
    %72 = arith.mulf %68, %71 : vector<1x128xf32>
    %73 = arith.mulf %70, %70 : vector<1x128xf32>
    %74 = arith.subf %72, %73 : vector<1x128xf32>
    %75 = vector.broadcast %70 : vector<1x128xf32> to vector<32x128xf32>
    %76 = arith.subf %59, %75 : vector<32x128xf32>
    %cst_13 = arith.constant 9.99999974E-6 : f32
    %77 = vector.broadcast %cst_13 : f32 to vector<1x128xf32>
    %78 = arith.addf %74, %77 : vector<1x128xf32>
    %79 = math.rsqrt %78 : vector<1x128xf32>
    %80 = vector.broadcast %79 : vector<1x128xf32> to vector<32x128xf32>
    %81 = arith.mulf %76, %80 : vector<32x128xf32>
    %82 = vector.broadcast %64 : vector<32x1xf32> to vector<32x128xf32>
    %83 = arith.mulf %81, %82 : vector<32x128xf32>
    %84 = vector.broadcast %65 : vector<32x1xf32> to vector<32x128xf32>
    %85 = arith.addf %83, %84 : vector<32x128xf32>
    %cst_14 = arith.constant 0.000000e+00 : f32
    %86 = vector.broadcast %cst_14 : f32 to vector<32x128xf32>
    %87 = arith.maximumf %85, %86 : vector<32x128xf32>
    %c0_15 = arith.constant 0 : index
    %c0_16 = arith.constant 0 : index
    %88 = vector.load %arg3[%c0_15, %c0_16] : memref<4x32xbf16, #tpu.memory_space<vmem>>, vector<4x32xbf16>
    %89 = arith.truncf %87 : vector<32x128xf32> to vector<32x128xbf16>
    %cst_17 = arith.constant dense<0.000000e+00> : vector<4x128xf32>
    %90 = tpu.matmul %88, %89, %cst_17 {dimension_numbers = #tpu.dot_dimension_numbers<[1], [0], [0], [1], [0, 0, 1, 1], [], []>} : vector<4x32xbf16>, vector<32x128xbf16>, vector<4x128xf32> -> vector<4x128xf32>
    %91 = vector.extract_strided_slice %1 {offsets = [0, 6], sizes = [4, 1], strides = [1, 1]} : vector<32x10xf32> to vector<4x1xf32>
    %92 = vector.broadcast %91 : vector<4x1xf32> to vector<4x128xf32>
    %93 = arith.addf %90, %92 : vector<4x128xf32>
    %c0_18 = arith.constant 0 : index
    %c0_19 = arith.constant 0 : index
    %94 = vector.load %arg5[%c0_18, %c0_19] : memref<4x128xf32, #tpu.memory_space<vmem>>, vector<4x128xf32>
    tpu.vector_store %arg5[%c0_18, %c0_19], %93 {strides = array<i32>} : memref<4x128xf32, #tpu.memory_space<vmem>>, vector<4x128xf32>,
    return
  }
  func.func @transform_0(%arg0: i32) -> (i32, i32) {
    %c0_i32 = arith.constant 0 : i32
    %c0_i32_0 = arith.constant 0 : i32
    return %c0_i32, %arg0 : i32, i32
  }
  func.func @transform_1(%arg0: i32) -> (i32, i32) {
    %c0_i32 = arith.constant 0 : i32
    %c0_i32_0 = arith.constant 0 : i32
    %c0_i32_1 = arith.constant 0 : i32
    return %c0_i32, %c0_i32_0 : i32, i32
  }
  func.func @transform_2(%arg0: i32) -> (i32, i32) {
    %c0_i32 = arith.constant 0 : i32
    %c0_i32_0 = arith.constant 0 : i32
    %c0_i32_1 = arith.constant 0 : i32
    return %c0_i32, %c0_i32_0 : i32, i32
  }
  func.func @transform_3(%arg0: i32) -> (i32, i32) {
    %c0_i32 = arith.constant 0 : i32
    %c0_i32_0 = arith.constant 0 : i32
    %c0_i32_1 = arith.constant 0 : i32
    return %c0_i32, %c0_i32_0 : i32, i32
  }
  func.func @transform_4(%arg0: i32) -> (i32, i32) {
    %c0_i32 = arith.constant 0 : i32
    %c0_i32_0 = arith.constant 0 : i32
    return %c0_i32, %arg0 : i32, i32
  }
}

</mosaic_0001>

<bundles_post_ra>
// kernel: mlp_base_forward.1
= control target key start
LH: loop header
LB: loop body
LE: loop exit
PB: predicated region body
PF: predicated region fallthrough
CT: control target
= control target key end

     0   :  { %s721_s15 = smov 0   ;;  %s841_s0 = inlined_call_operand.vmem [shape: f32[2,512], index: 0, kind: input, shape index: {}]   ;;  %s842_s1 = inlined_call_operand.vmem [shape: bf16[40,32], index: 1, kind: input, shape index: {}]   ;;  %s843_s2 = inlined_call_operand.vmem [shape: bf16[4,32], index: 2, kind: input, shape index: {}]   ;;  %s844_s3 = inlined_call_operand.vmem [shape: f32[32,10], index: 3, kind: input, shape index: {}]   ;;  %s845_s4 = inlined_call_operand.vmem [shape: f32[4,512], index: 4, kind: output, shape index: {}]  }
   0x1 LB: > { %s601_s16 = sadd.s32 4294967295, %s684_s15   ;;  %p605_p0 = scmp.ge.s32.totalorder %s684_s15, 1  ;;  %s684_s15 = sphi %s721_s15, %s14_s15  }
   0x2   : > { %p161_p1 = scmp.lt.s32.totalorder %s684_s15, 5 }
   0x4   : > { %p162_p2 = pnand %p605_p0, %p161_p1 }
   0x5   : > { %p185_p3 = scmp.lt.s32.totalorder (!%p162_p2), %s601_s16, 3 }
   0x6   : > { %165 = sbr.rel (%p162_p2) target bundleno = 553 (0x229), region = 36 }
   0xb   : > { %v732_v0 = vld [vmem:[%s844_s3] sm:$0xff]  ;;  %v686_v1 = vmov 9   ;;  %v687_v2 = vmov 8   ;;  %v737_v3 = vld [vmem:[%s844_s3 + $0x10] sm:$0xff]  ;;  %v745_v4 = vld [vmem:[%s844_s3 + $0x8] sm:$0xff]  ;;  %v688_v6 = vmov 0  }
   0xc   : > { %647 = vset.pattern.permute.xlu1 %v686_v1  ;;  %646 = vset.pattern.permute.xlu0 %v687_v2  ;;  %v753_v5 = vld [vmem:[%s844_s3 + $0x18] sm:$0xff]  ;;  %v689_v7 = vmov 7   ;;  %v690_v8 = vmov 1   ;;  %v691_v9 = vmov 2   ;;  %s847_s16 = smov (!%p185_p3, %s601_s16), 3  ;;  %vm386_vm3 = vcmask 261120  }
   0xd   : > { %225 = vperm.xlu1 %647, %v732_v0   ;;  %201 = vperm.xlu0 %646, %v732_v0   ;;  %s606_s25 = sshll.u32 %s847_s16, 1  ;;  %s607_s11 = sshll.u32 %s847_s16, 2 }
   0xe   : > { %648 = vset.pattern.permute.xlu2 %v687_v2  ;;  %s188_s28 = scalar_lea.vmem %s841_s0, %s606_s25  ;;  %s192_s14 = scalar_lea.vmem %s845_s4, %s607_s11 }
   0xf   : > { %211 = vperm.xlu2 %648, %v737_v3   ;;  %v194_v14 = vld [vmem:[%s188_s28] sm:$0x3] }
  0x10   : > { %v219_v17 = vperm.slane %v194_v14, 0  ;;  %v240_v18 = vperm.slane %v194_v14, 1  ;;  %v274_v45 = vrot.slane %v194_v14, 6 }
  0x15   : > { %229 = vperm.xlu1 %647, %v745_v4   ;;  %206 = vperm.xlu0 %646, %v745_v4  }
  0x17   : > { %649 = vset.pattern.permute.xlu2 %v686_v1 }
  0x18   : > { %233 = vperm.xlu2 %649, %v737_v3  }
  0x1d   : > { %237 = vperm.xlu1 %647, %v753_v5   ;;  %216 = vperm.xlu0 %646, %v753_v5  }
  0x20   : > { %650 = vset.pattern.permute.xlu2 %v688_v6 }
  0x21   : > { %250 = vperm.xlu2 %650, %v732_v0  }
  0x25   : > { %652 = vset.pattern.permute.xlu1 %v688_v6  ;;  %651 = vset.pattern.permute.xlu0 %v688_v6 }
  0x26   : > { %258 = vperm.xlu1 %652, %v737_v3   ;;  %254 = vperm.xlu0 %651, %v745_v4  }
  0x29   : > { %262 = vperm.xlu2 %650, %v753_v5  }
  0x2e   : > { %653 = vset.pattern.permute.xlu1 %v689_v7  ;;  %655 = vset.pattern.permute.xlu0 %v690_v8 }
  0x2f   : > { %270 = vperm.xlu1 %653, %v732_v0   ;;  %335 = vperm.xlu0 %655, %v753_v5  }
  0x31   : > { %654 = vset.pattern.permute.xlu2 %v690_v8 }
  0x32   : > { %331 = vperm.xlu2 %654, %v737_v3  }
  0x37   : > { %656 = vset.pattern.permute.xlu1 %v691_v9  ;;  %660 = vset.pattern.permute.xlu0 %v691_v9 }
  0x38   : > { %351 = vperm.xlu1 %656, %v737_v3   ;;  %343 = vperm.xlu0 %660, %v732_v0  }
  0x3a   : > { %657 = vset.pattern.permute.xlu2 %v691_v9 }
  0x3b   : > { %355 = vperm.xlu2 %657, %v753_v5  }
  0x40   : > { %658 = vset.pattern.permute.xlu1 %v690_v8 }
  0x41   : > { %323 = vperm.xlu1 %658, %v732_v0  }
  0x43   : > { %659 = vset.pattern.permute.xlu2 %v690_v8 }
  0x44   : > { %327 = vperm.xlu2 %659, %v745_v4  }
  0x49   : > { %661 = vset.pattern.permute.xlu1 %v691_v9 }
  0x4a   : > { %347 = vperm.xlu1 %661, %v745_v4  }
  0x69   : > { %v212_v10 = vpop.permute.xlu2 %211 }
  0x6a   : > { %v222_v24 = vmul.f32 %v219_v17, %v212_v10  ;;  %v692_v10 = vmov 3  }
  0x6b   : > { %663 = vset.pattern.permute.xlu1 %v692_v10  ;;  %664 = vset.pattern.permute.xlu0 %v692_v10 }
  0x6c   : > { %424 = vperm.xlu1 %663, %v745_v4   ;;  %432 = vperm.xlu0 %664, %v753_v5  }
  0x6d   : > { %662 = vset.pattern.permute.xlu2 %v692_v10 }
  0x6e   : > { %420 = vperm.xlu2 %662, %v732_v0  }
  0x72   : > { %v234_v13 = vpop.permute.xlu2 %233 }
  0x73   : > { %v243_v25 = vmul.f32 %v240_v18, %v234_v13 }
  0x75   : > { %v247_v34 = vadd.f32 %v243_v25, %v222_v24 }
  0x76   : > { %428 = vperm.xlu2 %662, %v737_v3  }
  0x7b   : > { %v251_v21 = vpop.permute.xlu2 %250 }
  0x7f   : > { %v226_v11 = vpop.permute.xlu1 %225  ;;  %v202_v12 = vpop.permute.xlu0 %201 }
  0x80   : > { %v241_v19 = vmul.f32 %v240_v18, %v226_v11  ;;  %v220_v20 = vmul.f32 %v219_v17, %v202_v12 }
  0x82   : > { %v245_v26 = vadd.f32 %v241_v19, %v220_v20  ;;  %v693_v19 = vmov 4  }
  0x83   : > { %v263_v32 = vpop.permute.xlu2 %262  ;;  %665 = vset.pattern.permute.xlu1 %v693_v19  ;;  %669 = vset.pattern.permute.xlu0 %v693_v19 }
  0x84   : > { %v780_v31 = vadd.f32 %v251_v21, %v245_v26  ;;  %489 = vperm.xlu1 %665, %v737_v3   ;;  %481 = vperm.xlu0 %669, %v732_v0  }
  0x85   : > { %666 = vset.pattern.permute.xlu2 %v693_v19 }
  0x86   : > { %v284_v40 = vmul.f32 %v780_v31, %v780_v31  ;;  %493 = vperm.xlu2 %666, %v753_v5  }
  0x87   : > { %v230_v15 = vpop.permute.xlu1 %229  ;;  %v207_v16 = vpop.permute.xlu0 %206 }
  0x88   : > { %v242_v27 = vmul.f32 %v240_v18, %v230_v15  ;;  %v221_v28 = vmul.f32 %v219_v17, %v207_v16 }
  0x8a   : > { %v246_v35 = vadd.f32 %v242_v27, %v221_v28 }
  0x8c   : > { %v332_v6 = vpop.permute.xlu2 %331 }
  0x8f   : > { %v238_v22 = vpop.permute.xlu1 %237  ;;  %v217_v23 = vpop.permute.xlu0 %216 }
  0x90   : > { %v244_v29 = vmul.f32 %v240_v18, %v238_v22  ;;  %v223_v30 = vmul.f32 %v219_v17, %v217_v23 }
  0x92   : > { %v248_v33 = vadd.f32 %v244_v29, %v223_v30 }
  0x94   : > { %v788_v41 = vadd.f32 %v263_v32, %v248_v33 }
  0x95   : > { %v356_v12 = vpop.permute.xlu2 %355 }
  0x96   : > { %v287_v46 = vmul.f32 %v788_v41, %v788_v41 }
  0x98   : > { %v259_v36 = vpop.permute.xlu1 %258  ;;  %v255_v37 = vpop.permute.xlu0 %254 }
  0x99   : > { %v782_v38 = vadd.f32 %v259_v36, %v247_v34  ;;  %v784_v39 = vadd.f32 %v255_v37, %v246_v35 }
  0x9b   : > { %v285_v42 = vmul.f32 %v784_v39, %v784_v39  ;;  %v286_v43 = vmul.f32 %v782_v38, %v782_v38 }
  0x9d   : > { %v288_v44 = vadd.f32 %v285_v42, %v284_v40 }
  0x9e   : > { %v328_v26 = vpop.permute.xlu2 %327 }
  0x9f   : > { %v289_v47 = vadd.f32 %v288_v44, %v286_v43  ;;  %v372_v44 = vld [vmem:[%s842_s1 + $0x10] sm:$0xf] }
  0xa1   : > { %v290_v48 = vadd.f32 %v289_v47, %v287_v46  ;;  %v796_v49 = vpop.permute.xlu1 %270  ;;  %v336_v15 = vpop.permute.xlu0 %335 }
  0xa2   : > { %v276_v50 = vmul.f32 %v274_v45, %v796_v49  ;;  %v281_v53 = vrot.slane %v796_v49, 6 }
  0xa3   : > { %v291_v51 = vrot.slane %v290_v48, 4 }
  0xa4   : > { %v278_v52 = vrot.slane %v276_v50, 1 }
  0xa5   : > { %v292_v54 = vadd.f32 %v291_v51, %v290_v48  ;;  %v382_v48 = vunpack.c.l.b16 %v372_v44  ;;  %v622_v51 = vld [vmem:[%s842_s1] sm:$0xff] }
  0xa6   : > { %v280_v55 = vadd.f32 %v278_v52, %v276_v50 }
  0xa7   : > { %v293_v56 = vrot.slane %v292_v54, 2  ;;  %v385_v52 = vpack.c.b16 %v382_v48, %v382_v48 }
  0xa8   : > { %v283_v57 = vadd.f32 %v281_v53, %v280_v55 }
  0xa9   : > { %v294_v58 = vadd.f32 %v293_v56, %v292_v54 }
  0xaa   : > { %v297_v60 = vmul.f32 0.03125, %v283_v57  ;;  %v352_v7 = vpop.permute.xlu1 %351  ;;  %v344_v33 = vpop.permute.xlu0 %343 }
  0xab   : > { %v295_v59 = vrot.slane %v294_v58, 1 }
  0xac   : > { %v299_v63 = vmul.f32 %v297_v60, %v297_v60  ;;  %v301_v16 = vperm.slane %v297_v60, 2 }
  0xad   : > { %v296_v61 = vadd.f32 %v295_v59, %v294_v58 }
  0xae   : > { %v304_v20 = vsub.f32 %v782_v38, %v301_v16  ;;  %v302_v23 = vsub.f32 %v780_v31, %v301_v16  ;;  %v305_v24 = vsub.f32 %v788_v41, %v301_v16  ;;  %v303_v25 = vsub.f32 %v784_v39, %v301_v16 }
  0xaf   : > { %v298_v62 = vmul.f32 0.03125, %v296_v61  ;;  %v694_v41 = vmov 5  }
  0xb0   : > { %667 = vset.pattern.permute.xlu1 %v694_v41  ;;  %668 = vset.pattern.permute.xlu2 %v694_v41 }
  0xb1   : > { %v300_v1 = vsub.f32 %v298_v62, %v299_v63  ;;  %509 = vperm.xlu1 %667, %v737_v3   ;;  %v623_v3 = vld [vmem:[%s842_s1 + $0x8] sm:$0xff]  ;;  %513 = vperm.xlu2 %668, %v753_v5  }
  0xb3   : > { %v306_v2 = vadd.f32 1e-05, %v300_v1  ;;  %v324_v14 = vpop.permute.xlu1 %323 }
  0xb5   : > { %674 = vrsqrt.f32 %v306_v2  ;;  %vm313_vm1 = vweird.f32 %v306_v2 }
  0xb9   : > { %670 = vset.pattern.permute.xlu1 %v693_v19  ;;  %501 = vperm.xlu2 %668, %v732_v0  }
  0xba   : > { %485 = vperm.xlu1 %670, %v745_v4  }
  0xbb   : > { %v675_v8 = vpop.eup %674 }
  0xbc   : > { %v308_v9 = vmul.f32 %v675_v8, %v306_v2  ;;  %vm314_vm0 = vweird.f32 %v675_v8  ;;  %v348_v32 = vpop.permute.xlu1 %347 }
  0xbd   : > { %vm315_vm2 = vmor %vm313_vm1, %vm314_vm0 }
  0xbe   : > { %v309_v11 = vmul.f32 %v675_v8, %v308_v9 }
  0xc0   : > { %v310_v13 = vmul.f32 0.5, %v309_v11 }
  0xc2   : > { %v311_v17 = vsub.f32 1.5, %v310_v13  ;;  %671 = vset.pattern.permute.xlu1 %v694_v41  ;;  %v439_v13 = vrot.slane %v796_v49, 1 }
  0xc3   : > { %505 = vperm.xlu1 %671, %v745_v4  }
  0xc4   : > { %v312_v18 = vmul.f32 %v675_v8, %v311_v17 }
  0xc6   : > { %v316_v21 = vsel %vm315_vm2, %v675_v8, %v312_v18 }
  0xc7   : > { %v317_v22 = vperm.slane %v316_v21, 2 }
  0xc8   : > { %v421_v53 = vpop.permute.xlu2 %420 }
  0xc9   : > { %v320_v27 = vmul.f32 %v317_v22, %v304_v20  ;;  %v318_v28 = vmul.f32 %v317_v22, %v302_v23  ;;  %v321_v29 = vmul.f32 %v317_v22, %v305_v24  ;;  %v319_v30 = vmul.f32 %v317_v22, %v303_v25 }
  0xcb   : > { %v340_v34 = vmul.f32 %v332_v6, %v320_v27  ;;  %v338_v35 = vmul.f32 %v324_v14, %v318_v28  ;;  %v341_v36 = vmul.f32 %v336_v15, %v321_v29  ;;  %v339_v37 = vmul.f32 %v328_v26, %v319_v30 }
  0xcc   : > { %v695_v29 = vmov 6  }
  0xcd   : > { %v360_v38 = vadd.f32 %v352_v7, %v340_v34  ;;  %v361_v40 = vadd.f32 %v356_v12, %v341_v36  ;;  %v359_v31 = vadd.f32 %v348_v32, %v339_v37  ;;  %v358_v42 = vadd.f32 %v344_v33, %v338_v35  ;;  %672 = vset.pattern.permute.xlu2 %v695_v29 }
  0xce   : > { %673 = vset.pattern.permute.xlu0 %v695_v29  ;;  %528 = vperm.xlu2 %672, %v732_v0  }
  0xcf   : > { %v364_v39 = vmax.f32 %v360_v38, 0.0  ;;  %v365_v43 = vmax.f32 %v361_v40, 0.0  ;;  %v363_v45 = vmax.f32 %v359_v31, 0.0  ;;  %v362_v46 = vmax.f32 %v358_v42, 0.0 }
  0xd0   : > { %v429_v61 = vpop.permute.xlu2 %428 }
  0xd1   : > { %v367_v47 = vpack.c.bf16 %v365_v43, %v364_v39  ;;  %v366_v50 = vpack.c.bf16 %v363_v45, %v362_v46 }
  0xd3   : > { %402 = vmatpush.bf16.msra.mxu0 %v367_v47  ;;  %624 = vmatpush.bf16.msra.mxu2 %v367_v47 }
  0xd4   : > { %625 = vmatpush.bf16.msra.mxu3 %v367_v47 }
  0xd7   : > { %403 = vmatpush.bf16.msra.mxu0 %v366_v50  ;;  %626 = vmatpush.bf16.msra.mxu2 %v366_v50 }
  0xd8   : > { %627 = vmatpush.bf16.msra.mxu3 %v366_v50 }
  0xda   : > { %616 = vmatmul.msk.bf16.vlgmr.msra.gmra.mxu0 %vm386_vm3, %v622_v51  ;;  %617 = vmatmul.msk.bf16.vlgmr.msra.gmra.mxu2 %vm386_vm3, %v623_v3 }
  0xdb   : > { %618 = vmatmul.msk.bf16.vlgmr.msra.gmra.mxu3 %vm386_vm3, %v385_v52 }
  0xde   : > { %v425_v56 = vpop.permute.xlu1 %424  ;;  %v433_v2 = vpop.permute.xlu0 %432 }
  0xe0   : > { %v494_v27 = vpop.permute.xlu2 %493 }
  0xf6   : > { %v490_v20 = vpop.permute.xlu1 %489  ;;  %v482_v43 = vpop.permute.xlu0 %481 }
 0x10b   : > { %v514_v36 = vpop.permute.xlu2 %513 }
 0x113   : > { %v502_v52 = vpop.permute.xlu2 %501 }
 0x123   : > { %v510_v26 = vpop.permute.xlu1 %509 }
 0x12c   : > { %v486_v33 = vpop.permute.xlu1 %485 }
 0x135   : > { %v506_v47 = vpop.permute.xlu1 %505 }
 0x157   : > { %v405_v54 = vpop.f32.mrf.mxu0 }
 0x158   : > { %v435_v57 = vadd.f32 %v421_v53, %v405_v54 }
 0x15a   : > { %v442_v62 = vmul.f32 %v435_v57, %v435_v57 }
 0x15d   : > { %v410_v55 = vpop.f32.mrf.mxu2 }
 0x15e   : > { %v415_v58 = vpop.f32.mrf.mxu3  ;;  %v437_v63 = vadd.f32 %v429_v61, %v410_v55 }
 0x15f   : > { %v407_v59 = vpop.f32.mrf.mxu0  ;;  %v441_v15 = vadd.f32 %v439_v13, %v415_v58 }
 0x160   : > { %v436_v60 = vadd.f32 %v425_v56, %v407_v59  ;;  %v444_v7 = vmul.f32 %v437_v63, %v437_v63 }
 0x161   : > { %v455_v18 = vmul.f32 0.03125, %v441_v15 }
 0x162   : > { %v443_v1 = vmul.f32 %v436_v60, %v436_v60 }
 0x163   : > { %v457_v22 = vmul.f32 %v455_v18, %v455_v18  ;;  %v459_v34 = vperm.slane %v455_v18, 0 }
 0x164   : > { %v446_v6 = vadd.f32 %v443_v1, %v442_v62  ;;  %v529_v1 = vpop.permute.xlu2 %528 }
 0x165   : > { %v412_v5 = vpop.f32.mrf.mxu2  ;;  %v461_v38 = vsub.f32 %v436_v60, %v459_v34  ;;  %v462_v42 = vsub.f32 %v437_v63, %v459_v34  ;;  %v460_v39 = vsub.f32 %v435_v57, %v459_v34  ;;  %v524_v63 = vld [vmem:[%s843_s2] sm:$0x3] }
 0x166   : > { %v438_v8 = vadd.f32 %v433_v2, %v412_v5  ;;  %v417_v4 = vpop.f32.mrf.mxu3  ;;  %v447_v10 = vadd.f32 %v446_v6, %v444_v7 }
 0x168   : > { %v445_v9 = vmul.f32 %v438_v8, %v438_v8  ;;  %v463_v31 = vsub.f32 %v438_v8, %v459_v34 }
 0x16a   : > { %v448_v11 = vadd.f32 %v447_v10, %v445_v9 }
 0x16c   : > { %v449_v12 = vrot.slane %v448_v11, 4 }
 0x16e   : > { %v450_v14 = vadd.f32 %v449_v12, %v448_v11 }
 0x170   : > { %v451_v16 = vrot.slane %v450_v14, 2 }
 0x172   : > { %v452_v17 = vadd.f32 %v451_v16, %v450_v14 }
 0x174   : > { %v453_v19 = vrot.slane %v452_v17, 1 }
 0x176   : > { %v454_v21 = vadd.f32 %v453_v19, %v452_v17 }
 0x178   : > { %v456_v23 = vmul.f32 0.03125, %v454_v21 }
 0x17a   : > { %v458_v24 = vsub.f32 %v456_v23, %v457_v22 }
 0x17c   : > { %v464_v25 = vadd.f32 1e-05, %v458_v24 }
 0x17e   : > { %676 = vrsqrt.f32 %v464_v25  ;;  %vm471_vm5 = vweird.f32 %v464_v25 }
 0x184   : > { %v677_v28 = vpop.eup %676 }
 0x185   : > { %v466_v49 = vmul.f32 %v677_v28, %v464_v25  ;;  %vm472_vm4 = vweird.f32 %v677_v28 }
 0x186   : > { %vm473_vm6 = vmor %vm471_vm5, %vm472_vm4 }
 0x187   : > { %v467_v30 = vmul.f32 %v677_v28, %v466_v49 }
 0x189   : > { %v468_v32 = vmul.f32 0.5, %v467_v30 }
 0x18b   : > { %v469_v35 = vsub.f32 1.5, %v468_v32 }
 0x18d   : > { %v470_v37 = vmul.f32 %v677_v28, %v469_v35 }
 0x18f   : > { %v474_v40 = vsel %vm473_vm6, %v677_v28, %v470_v37 }
 0x190   : > { %v475_v41 = vperm.slane %v474_v40, 0 }
 0x192   : > { %v478_v44 = vmul.f32 %v475_v41, %v462_v42  ;;  %v479_v45 = vmul.f32 %v475_v41, %v463_v31  ;;  %v477_v0 = vmul.f32 %v475_v41, %v461_v38  ;;  %v476_v46 = vmul.f32 %v475_v41, %v460_v39 }
 0x194   : > { %v498_v48 = vmul.f32 %v490_v20, %v478_v44  ;;  %v499_v50 = vmul.f32 %v494_v27, %v479_v45  ;;  %v497_v51 = vmul.f32 %v486_v33, %v477_v0  ;;  %v496_v3 = vmul.f32 %v482_v43, %v476_v46 }
 0x196   : > { %v518_v53 = vadd.f32 %v510_v26, %v498_v48  ;;  %v519_v54 = vadd.f32 %v514_v36, %v499_v50  ;;  %v516_v55 = vadd.f32 %v502_v52, %v496_v3  ;;  %v517_v56 = vadd.f32 %v506_v47, %v497_v51 }
 0x198   : > { %v522_v58 = vmax.f32 %v518_v53, 0.0  ;;  %v523_v59 = vmax.f32 %v519_v54, 0.0  ;;  %v520_v60 = vmax.f32 %v516_v55, 0.0  ;;  %v521_v57 = vmax.f32 %v517_v56, 0.0 }
 0x19a   : > { %v526_v61 = vpack.c.bf16 %v523_v59, %v522_v58  ;;  %v525_v62 = vpack.c.bf16 %v521_v57, %v520_v60 }
 0x19c   : > { %540 = vmatpush.bf16.msra.mxu1 %v526_v61 }
 0x1a0   : > { %541 = vmatpush.bf16.msra.mxu1 %v525_v62 }
 0x1a3   : > { %619 = vmatmul.msk.bf16.vlgmr.msra.gmra.mxu1 %vm386_vm3, %v524_v63 }
 0x220   : > { %v543_v2 = vpop.f32.mrf.mxu1 }
 0x221   : > { %v544_v6 = vadd.f32 %v543_v2, %v529_v1 }
 0x223   : > { %547 = vst [vmem:[%s192_s14] sm:$0xf] %v544_v6 }
 0x228   : > { %v545_v5 = vpop.f32.mrf.mxu1 }
 0x229 PF: > { %s14_s15 = sadd.s32 1, %s684_s15  }
 0x22a   : > { %p11_p4 = scmp.ge.s32.totalorder %s14_s15, 6  }
 0x22c   :  { %13 = sbr.rel (!%p11_p4) target bundleno = 1 (0x1), region = 66 }

</bundles_post_ra>
